<compile_context>
chip_gen: v7x
topology: tpu7x:2x2x1
jax: 0.10.0
libtpu: 0.0.40
codegen_flags: <defaults>
</compile_context>

<pallas_src>
import functools

import jax
import jax.numpy as jnp
from jax import lax
from jax.experimental import pallas as pl
from jax.experimental.pallas import tpu as pltpu
import numpy as np


def _round_up(x, m):
    return ((x + m - 1) // m) * m


def _bert_embeddings_kernel(ids_smem,             # (N_pad,)   int32, SMEM (scalar prefetch)
                            type_ids_ref,         # (TILE_S,1) int32, VMEM
                            word_hbm,             # (V, H)     embedding table, HBM (pl.ANY)
                            pos_ref,              # (TILE_S,H) position rows for this tile
                            type_tab_ref,         # (T, H)     token-type table, VMEM resident
                            gamma_ref, beta_ref,  # (1, H)     LayerNorm params
                            out_ref,              # (TILE_S,H) output slab
                            wbuf, sem,            # scratch: gather buffer + DMA semaphore
                            *, eps, tile_s, num_s_tiles):
    b = pl.program_id(0)
    s = pl.program_id(1)
    base = (b * num_s_tiles + s) * tile_s

    # ---- 1. Kick off the word-row gather for the whole tile (DMAs in flight). ----
    @pl.loop(0, tile_s)
    def _issue(r):
        row = ids_smem[base + r]
        pltpu.make_async_copy(word_hbm.at[pl.ds(row, 1)],
                              wbuf.at[pl.ds(r, 1)],
                              sem.at[0]).start()

    # ---- 2. While the gather is in flight: positions + token-type contribution. ----
    x = pos_ref[...].astype(jnp.float32)                       # (TILE_S, H)
    tvec = type_ids_ref[...]                                   # (TILE_S, 1) int32
    type_tab = type_tab_ref[...].astype(jnp.float32)           # (T, H), tiny & resident
    for t in range(type_tab_ref.shape[0]):                     # static, T ~ 2
        mask = (tvec == t).astype(jnp.float32)                 # (TILE_S, 1)
        x = x + mask * type_tab[t:t + 1, :]                    # broadcast row select

    # ---- 3. Drain the gather (every copy signalled the same sem, equal sizes). ----
    @pl.loop(0, tile_s)
    def _drain(r):
        pltpu.make_async_copy(word_hbm.at[pl.ds(0, 1)],
                              wbuf.at[pl.ds(0, 1)],
                              sem.at[0]).wait()

    x = x + wbuf[...].astype(jnp.float32)

    # ---- 4. LayerNorm over hidden axis (biased variance, torch semantics). ----
    mean = jnp.mean(x, axis=-1, keepdims=True)
    xc = x - mean
    var = jnp.mean(xc * xc, axis=-1, keepdims=True)
    y = xc * lax.rsqrt(var + eps)
    y = y * gamma_ref[...].astype(jnp.float32) + beta_ref[...].astype(jnp.float32)

    # TODO(synk): nn.Dropout omitted (eval-mode identity).
    out_ref[...] = y.astype(out_ref.dtype)


def bert_embeddings(input_ids,
                    token_type_ids,
                    word_emb, pos_emb, type_emb,
                    ln_gamma, ln_beta,
                    *, eps=1e-12, past_key_values_length=0, tile_s=256):
    """Pallas implementation of BertEmbeddings.forward (absolute position embeddings)."""
    B, S = input_ids.shape
    V, H = word_emb.shape
    T = type_emb.shape[0]

    # Sequence tile: multiple of 8 (sublane), capped at tile_s, dividing S_pad.
    ts = min(tile_s, _round_up(S, 8))
    ts = max(8, (ts // 8) * 8)
    S_pad = _round_up(S, ts)
    num_s_tiles = S_pad // ts
    N_pad = B * S_pad
    pad = S_pad - S

    ids = input_ids.astype(jnp.int32)
    if token_type_ids is None:
        typ = jnp.zeros((B, S), dtype=jnp.int32)
    else:
        typ = token_type_ids.astype(jnp.int32)
    if pad:
        ids = jnp.pad(ids, ((0, 0), (0, pad)))          # pad id 0 is always in-bounds
        typ = jnp.pad(typ, ((0, 0), (0, pad)))
    ids_flat = ids.reshape(N_pad)                       # -> SMEM (scalar prefetch)
    typ_col = typ.reshape(N_pad, 1)                     # -> VMEM vector input

    # Contiguous position rows for this call (static slice), padded to S_pad.
    pos_slab = lax.slice_in_dim(pos_emb, past_key_values_length,
                                past_key_values_length + S, axis=0)
    if pad:
        pos_slab = jnp.pad(pos_slab, ((0, pad), (0, 0)))

    gamma2 = ln_gamma.reshape(1, H)
    beta2 = ln_beta.reshape(1, H)

    kernel = functools.partial(_bert_embeddings_kernel,
                               eps=eps, tile_s=ts, num_s_tiles=num_s_tiles)

    grid_spec = pltpu.PrefetchScalarGridSpec(
        num_scalar_prefetch=1,
        grid=(B, num_s_tiles),
        in_specs=[
            # token type ids for the tile (VMEM vector, not SMEM).
            pl.BlockSpec((ts, 1), lambda b, s, ids: (b * num_s_tiles + s, 0)),
            # word table stays in HBM; gathered manually inside the kernel.
            pl.BlockSpec(memory_space=pl.ANY),
            # positions: one rectangular DMA per tile.
            pl.BlockSpec((ts, H), lambda b, s, ids: (s, 0)),
            # token type table: constant block index -> effectively VMEM resident.
            pl.BlockSpec((T, H), lambda b, s, ids: (0, 0)),
            # LayerNorm gamma / beta.
            pl.BlockSpec((1, H), lambda b, s, ids: (0, 0)),
            pl.BlockSpec((1, H), lambda b, s, ids: (0, 0)),
        ],
        out_specs=pl.BlockSpec((ts, H), lambda b, s, ids: (b * num_s_tiles + s, 0)),
        scratch_shapes=[
            pltpu.VMEM((ts, H), word_emb.dtype),        # word-row gather buffer
            pltpu.SemaphoreType.DMA((1,)),              # shared DMA completion sem
        ],
    )

    tbl_bytes = jnp.dtype(word_emb.dtype).itemsize
    cost = pl.CostEstimate(
        flops=int(10 * N_pad * H),
        transcendentals=int(N_pad),
        bytes_accessed=int(N_pad * H * tbl_bytes          # word gather
                           + B * S_pad * H * tbl_bytes    # positions (per batch tile)
                           + T * H * tbl_bytes            # type table (once)
                           + N_pad * H * 4                # output
                           + N_pad * 8),                  # ids + type ids
    )

    out_flat = pl.pallas_call(
        kernel,
        grid_spec=grid_spec,
        out_shape=jax.ShapeDtypeStruct((N_pad, H), jnp.float32),
        compiler_params=pltpu.CompilerParams(
            dimension_semantics=("parallel", "parallel")),
        cost_estimate=cost,
    )(ids_flat, typ_col, word_emb, pos_slab, type_emb, gamma2, beta2)

    out = out_flat.reshape(B, S_pad, H)
    if pad:
        out = out[:, :S, :]
    return out


def _reference(input_ids, token_type_ids, word_emb, pos_emb, type_emb, gamma, beta, eps):
    B, S = input_ids.shape
    pos_ids = jnp.broadcast_to(jnp.arange(S), (B, S))
    x = (jnp.take(word_emb, input_ids, axis=0)
         + jnp.take(pos_emb, pos_ids, axis=0)
         + jnp.take(type_emb, token_type_ids, axis=0))
    mean = jnp.mean(x, axis=-1, keepdims=True)
    var = jnp.mean((x - mean) ** 2, axis=-1, keepdims=True)
    return (x - mean) * lax.rsqrt(var + eps) * gamma + beta


if __name__ == "__main__":
    # Small synthetic BERT config.
    vocab_size = 100
    hidden_size = 32
    max_position_embeddings = 64
    type_vocab_size = 2
    pad_token_id = 0
    layer_norm_eps = 1e-12

    key = jax.random.PRNGKey(0)
    k_word, k_pos, k_type, k_ids, k_typ = jax.random.split(key, 5)

    word_emb = 0.02 * jax.random.normal(k_word, (vocab_size, hidden_size), dtype=jnp.float32)
    word_emb = word_emb.at[pad_token_id].set(0.0)   # nn.Embedding padding_idx row is zero
    pos_emb = 0.02 * jax.random.normal(k_pos, (max_position_embeddings, hidden_size), dtype=jnp.float32)
    type_emb = 0.02 * jax.random.normal(k_type, (type_vocab_size, hidden_size), dtype=jnp.float32)
    ln_gamma = jnp.ones((hidden_size,), dtype=jnp.float32)
    ln_beta = jnp.zeros((hidden_size,), dtype=jnp.float32)

    # Test 1: tile exactly matches the sequence length.
    B, S = 2, 8
    input_ids = jax.random.randint(k_ids, (B, S), 0, vocab_size, dtype=jnp.int32)
    token_type_ids = jax.random.randint(k_typ, (B, S), 0, type_vocab_size, dtype=jnp.int32)

    out = bert_embeddings(input_ids, token_type_ids,
                          word_emb, pos_emb, type_emb,
                          ln_gamma, ln_beta, eps=layer_norm_eps)
    out = jax.block_until_ready(out)
    ref = _reference(input_ids, token_type_ids, word_emb, pos_emb, type_emb,
                     ln_gamma, ln_beta, layer_norm_eps)
    np.testing.assert_allclose(np.asarray(out), np.asarray(ref), atol=1e-5, rtol=1e-5)

    # Test 2: sequence length that needs padding to the tile size.
    B2, S2 = 2, 12
    input_ids2 = jax.random.randint(jax.random.PRNGKey(1), (B2, S2), 0, vocab_size, dtype=jnp.int32)
    token_type_ids2 = jax.random.randint(jax.random.PRNGKey(2), (B2, S2), 0, type_vocab_size,
                                         dtype=jnp.int32)
    out2 = bert_embeddings(input_ids2, token_type_ids2,
                           word_emb, pos_emb, type_emb,
                           ln_gamma, ln_beta, eps=layer_norm_eps)
    out2 = jax.block_until_ready(out2)
    ref2 = _reference(input_ids2, token_type_ids2, word_emb, pos_emb, type_emb,
                      ln_gamma, ln_beta, layer_norm_eps)
    np.testing.assert_allclose(np.asarray(out2), np.asarray(ref2), atol=1e-5, rtol=1e-5)

    print("KERNEL_OK")
</pallas_src>

<mosaic_0001>
module attributes {stable_mosaic.version = 11 : i64} {
  func.func @_bert_embeddings_kernel(%arg0: i32, %arg1: i32, %arg2: memref<16xi32, #tpu.memory_space<smem>>, %arg3: memref<8x1xi32, #tpu.memory_space<vmem>>, %arg4: memref<100x32xf32, #tpu.memory_space<any>>, %arg5: memref<8x32xf32, #tpu.memory_space<vmem>>, %arg6: memref<2x32xf32, #tpu.memory_space<vmem>>, %arg7: memref<1x32xf32, #tpu.memory_space<vmem>>, %arg8: memref<1x32xf32, #tpu.memory_space<vmem>>, %arg9: memref<8x32xf32, #tpu.memory_space<vmem>>, %arg10: memref<8x32xf32, #tpu.memory_space<vmem>>, %arg11: memref<1x!tpu.dma_semaphore, #tpu.memory_space<semaphore_mem>>) attributes {dimension_semantics = [#tpu.dimension_semantics<parallel>, #tpu.dimension_semantics<parallel>], iteration_bounds = array<i64: 2, 1>, scalar_prefetch = 1 : i64, scratch_operands = 2 : i64, tpu.core_type = #tpu.core_type<tc>, window_params = [{transform_indices = @transform_0, window_bounds = array<i64: 8, 1>}, {}, {transform_indices = @transform_2, window_bounds = array<i64: 8, 32>}, {pipeline_mode = #tpu.pipeline_mode<synchronous>, transform_indices = @transform_3, window_bounds = array<i64: 2, 32>}, {pipeline_mode = #tpu.pipeline_mode<synchronous>, transform_indices = @transform_4, window_bounds = array<i64: 1, 32>}, {pipeline_mode = #tpu.pipeline_mode<synchronous>, transform_indices = @transform_5, window_bounds = array<i64: 1, 32>}, {transform_indices = @transform_6, window_bounds = array<i64: 8, 32>}]} {
    %c1_i32 = arith.constant 1 : i32
    %0 = arith.muli %arg0, %c1_i32 : i32
    %1 = arith.addi %0, %arg1 : i32
    %c8_i32 = arith.constant 8 : i32
    %2 = arith.muli %1, %c8_i32 : i32
    %c0_i32 = arith.constant 0 : i32
    %c8_i32_0 = arith.constant 8 : i32
    %3 = arith.addi %c0_i32, %c8_i32_0 : i32
    %c1_i32_1 = arith.constant 1 : i32
    scf.for %arg12 = %c0_i32 to %3 step %c1_i32_1  : i32 {
      %c1_i32_25 = arith.constant 1 : i32
      %51 = arith.muli %arg12, %c1_i32_25 : i32
      %c0_i32_26 = arith.constant 0 : i32
      %52 = arith.addi %c0_i32_26, %51 : i32
      %53 = arith.addi %2, %52 : i32
      %54 = arith.index_cast %53 : i32 to index
      %55 = memref.load %arg2[%54] : memref<16xi32, #tpu.memory_space<smem>>
      %c0_i32_27 = arith.constant 0 : i32
      %c0_i32_28 = arith.constant 0 : i32
      %56 = tpu.memref_slice %arg4[%55, %c0_i32_28] : memref<100x32xf32, #tpu.memory_space<any>> -> memref<1x32xf32, #tpu.memory_space<any>>
      %c0_i32_29 = arith.constant 0 : i32
      %57 = tpu.memref_slice %arg10[%52, %c0_i32_29] : memref<8x32xf32, #tpu.memory_space<vmem>> -> memref<1x32xf32, #tpu.memory_space<vmem>>
      %58 = tpu.memref_slice %arg11[%c0_i32_27] : memref<1x!tpu.dma_semaphore, #tpu.memory_space<semaphore_mem>> -> memref<1x!tpu.dma_semaphore, #tpu.memory_space<semaphore_mem>>
      %59 = tpu.memref_squeeze %58 : memref<1x!tpu.dma_semaphore, #tpu.memory_space<semaphore_mem>> -> memref<!tpu.dma_semaphore, #tpu.memory_space<semaphore_mem>>
      tpu.enqueue_dma source(%56 : memref<1x32xf32, #tpu.memory_space<any>>) target(%57 : memref<1x32xf32, #tpu.memory_space<vmem>>) target_semaphore(%59 : memref<!tpu.dma_semaphore, #tpu.memory_space<semaphore_mem>>)
    }
    %c8_i32_2 = arith.constant 8 : i32
    %c0 = arith.constant 0 : index
    %c0_3 = arith.constant 0 : index
    %4 = vector.load %arg5[%c0, %c0_3] : memref<8x32xf32, #tpu.memory_space<vmem>>, vector<8x32xf32>
    %c0_4 = arith.constant 0 : index
    %c0_5 = arith.constant 0 : index
    %5 = vector.load %arg3[%c0_4, %c0_5] : memref<8x1xi32, #tpu.memory_space<vmem>>, vector<8x1xi32>
    %c0_6 = arith.constant 0 : index
    %c0_7 = arith.constant 0 : index
    %6 = vector.load %arg6[%c0_6, %c0_7] : memref<2x32xf32, #tpu.memory_space<vmem>>, vector<2x32xf32>
    %c0_i32_8 = arith.constant 0 : i32
    %7 = vector.broadcast %c0_i32_8 : i32 to vector<8x1xi32>
    %8 = arith.cmpi eq, %5, %7 : vector<8x1xi32>
    %9 = arith.extui %8 : vector<8x1xi1> to vector<8x1xi32>
    %10 = arith.sitofp %9 : vector<8x1xi32> to vector<8x1xf32>
    %11 = vector.extract_strided_slice %6 {offsets = [0, 0], sizes = [1, 32], strides = [1, 1]} : vector<2x32xf32> to vector<1x32xf32>
    %12 = vector.broadcast %10 : vector<8x1xf32> to vector<8x32xf32>
    %13 = vector.broadcast %11 : vector<1x32xf32> to vector<8x32xf32>
    %14 = arith.mulf %12, %13 : vector<8x32xf32>
    %15 = arith.addf %4, %14 : vector<8x32xf32>
    %c1_i32_9 = arith.constant 1 : i32
    %16 = vector.broadcast %c1_i32_9 : i32 to vector<8x1xi32>
    %17 = arith.cmpi eq, %5, %16 : vector<8x1xi32>
    %18 = arith.extui %17 : vector<8x1xi1> to vector<8x1xi32>
    %19 = arith.sitofp %18 : vector<8x1xi32> to vector<8x1xf32>
    %20 = vector.extract_strided_slice %6 {offsets = [1, 0], sizes = [1, 32], strides = [1, 1]} : vector<2x32xf32> to vector<1x32xf32>
    %21 = vector.broadcast %19 : vector<8x1xf32> to vector<8x32xf32>
    %22 = vector.broadcast %20 : vector<1x32xf32> to vector<8x32xf32>
    %23 = arith.mulf %21, %22 : vector<8x32xf32>
    %24 = arith.addf %15, %23 : vector<8x32xf32>
    %c0_i32_10 = arith.constant 0 : i32
    %c8_i32_11 = arith.constant 8 : i32
    %25 = arith.addi %c0_i32_10, %c8_i32_11 : i32
    %c1_i32_12 = arith.constant 1 : i32
    scf.for %arg12 = %c0_i32_10 to %25 step %c1_i32_12  : i32 {
      %c0_i32_25 = arith.constant 0 : i32
      %c0_i32_26 = arith.constant 0 : i32
      %c0_i32_27 = arith.constant 0 : i32
      %51 = tpu.memref_slice %arg4[%c0_i32_26, %c0_i32_27] : memref<100x32xf32, #tpu.memory_space<any>> -> memref<1x32xf32, #tpu.memory_space<any>>
      %c0_i32_28 = arith.constant 0 : i32
      %c0_i32_29 = arith.constant 0 : i32
      %52 = tpu.memref_slice %arg10[%c0_i32_28, %c0_i32_29] : memref<8x32xf32, #tpu.memory_space<vmem>> -> memref<1x32xf32, #tpu.memory_space<vmem>>
      %53 = tpu.memref_slice %arg11[%c0_i32_25] : memref<1x!tpu.dma_semaphore, #tpu.memory_space<semaphore_mem>> -> memref<1x!tpu.dma_semaphore, #tpu.memory_space<semaphore_mem>>
      %54 = tpu.memref_squeeze %53 : memref<1x!tpu.dma_semaphore, #tpu.memory_space<semaphore_mem>> -> memref<!tpu.dma_semaphore, #tpu.memory_space<semaphore_mem>>
      tpu.wait_dma2 semaphore(%54 : memref<!tpu.dma_semaphore, #tpu.memory_space<semaphore_mem>>) src(%51 : memref<1x32xf32, #tpu.memory_space<any>>) dst(%52 : memref<1x32xf32, #tpu.memory_space<vmem>>)
    }
    %c0_13 = arith.constant 0 : index
    %c0_14 = arith.constant 0 : index
    %26 = vector.load %arg10[%c0_13, %c0_14] : memref<8x32xf32, #tpu.memory_space<vmem>>, vector<8x32xf32>
    %27 = arith.addf %24, %26 : vector<8x32xf32>
    %cst = arith.constant dense<0.000000e+00> : vector<8xf32>
    %28 = vector.multi_reduction <add>, %27, %cst [1] : vector<8x32xf32> to vector<8xf32>
    %29 = vector.shape_cast %28 : vector<8xf32> to vector<8x1xf32>
    %cst_15 = arith.constant 3.200000e+01 : f32
    %30 = vector.broadcast %cst_15 : f32 to vector<8x1xf32>
    %31 = arith.divf %29, %30 : vector<8x1xf32>
    %32 = vector.broadcast %31 : vector<8x1xf32> to vector<8x32xf32>
    %33 = arith.subf %27, %32 : vector<8x32xf32>
    %34 = arith.mulf %33, %33 : vector<8x32xf32>
    %cst_16 = arith.constant dense<0.000000e+00> : vector<8xf32>
    %35 = vector.multi_reduction <add>, %34, %cst_16 [1] : vector<8x32xf32> to vector<8xf32>
    %36 = vector.shape_cast %35 : vector<8xf32> to vector<8x1xf32>
    %cst_17 = arith.constant 3.200000e+01 : f32
    %37 = vector.broadcast %cst_17 : f32 to vector<8x1xf32>
    %38 = arith.divf %36, %37 : vector<8x1xf32>
    %cst_18 = arith.constant 9.99999996E-13 : f32
    %39 = vector.broadcast %cst_18 : f32 to vector<8x1xf32>
    %40 = arith.addf %38, %39 : vector<8x1xf32>
    %41 = math.rsqrt %40 : vector<8x1xf32>
    %42 = vector.broadcast %41 : vector<8x1xf32> to vector<8x32xf32>
    %43 = arith.mulf %33, %42 : vector<8x32xf32>
    %c0_19 = arith.constant 0 : index
    %c0_20 = arith.constant 0 : index
    %44 = vector.load %arg7[%c0_19, %c0_20] : memref<1x32xf32, #tpu.memory_space<vmem>>, vector<1x32xf32>
    %45 = vector.broadcast %44 : vector<1x32xf32> to vector<8x32xf32>
    %46 = arith.mulf %43, %45 : vector<8x32xf32>
    %c0_21 = arith.constant 0 : index
    %c0_22 = arith.constant 0 : index
    %47 = vector.load %arg8[%c0_21, %c0_22] : memref<1x32xf32, #tpu.memory_space<vmem>>, vector<1x32xf32>
    %48 = vector.broadcast %47 : vector<1x32xf32> to vector<8x32xf32>
    %49 = arith.addf %46, %48 : vector<8x32xf32>
    %c0_23 = arith.constant 0 : index
    %c0_24 = arith.constant 0 : index
    %50 = vector.load %arg9[%c0_23, %c0_24] : memref<8x32xf32, #tpu.memory_space<vmem>>, vector<8x32xf32>
    tpu.vector_store %arg9[%c0_23, %c0_24], %49 {strides = array<i32>} : memref<8x32xf32, #tpu.memory_space<vmem>>, vector<8x32xf32>,
    return
  }
  func.func @transform_0(%arg0: i32, %arg1: i32, %arg2: memref<16xi32, #tpu.memory_space<smem>>) -> (i32, i32) {
    %c1_i32 = arith.constant 1 : i32
    %0 = arith.muli %arg0, %c1_i32 : i32
    %1 = arith.addi %0, %arg1 : i32
    %c0_i32 = arith.constant 0 : i32
    %c0_i32_0 = arith.constant 0 : i32
    return %1, %c0_i32 : i32, i32
  }
  func.func @transform_2(%arg0: i32, %arg1: i32, %arg2: memref<16xi32, #tpu.memory_space<smem>>) -> (i32, i32) {
    %c0_i32 = arith.constant 0 : i32
    %c0_i32_0 = arith.constant 0 : i32
    return %arg1, %c0_i32 : i32, i32
  }
  func.func @transform_3(%arg0: i32, %arg1: i32, %arg2: memref<16xi32, #tpu.memory_space<smem>>) -> (i32, i32) {
    %c0_i32 = arith.constant 0 : i32
    %c0_i32_0 = arith.constant 0 : i32
    %c0_i32_1 = arith.constant 0 : i32
    return %c0_i32, %c0_i32_0 : i32, i32
  }
  func.func @transform_4(%arg0: i32, %arg1: i32, %arg2: memref<16xi32, #tpu.memory_space<smem>>) -> (i32, i32) {
    %c0_i32 = arith.constant 0 : i32
    %c0_i32_0 = arith.constant 0 : i32
    %c0_i32_1 = arith.constant 0 : i32
    return %c0_i32, %c0_i32_0 : i32, i32
  }
  func.func @transform_5(%arg0: i32, %arg1: i32, %arg2: memref<16xi32, #tpu.memory_space<smem>>) -> (i32, i32) {
    %c0_i32 = arith.constant 0 : i32
    %c0_i32_0 = arith.constant 0 : i32
    %c0_i32_1 = arith.constant 0 : i32
    return %c0_i32, %c0_i32_0 : i32, i32
  }
  func.func @transform_6(%arg0: i32, %arg1: i32, %arg2: memref<16xi32, #tpu.memory_space<smem>>) -> (i32, i32) {
    %c1_i32 = arith.constant 1 : i32
    %0 = arith.muli %arg0, %c1_i32 : i32
    %1 = arith.addi %0, %arg1 : i32
    %c0_i32 = arith.constant 0 : i32
    %c0_i32_0 = arith.constant 0 : i32
    return %1, %c0_i32 : i32, i32
  }
}

</mosaic_0001>

<bundles_post_ra>
// kernel: tpu_custom_call.1
= control target key start
LH: loop header
LB: loop body
LE: loop exit
PB: predicated region body
PF: predicated region fallthrough
CT: control target
= control target key end

     0   :  { %s919_s0 = inlined_call_operand.vmem [shape: s32[16], index: 0, kind: input, shape index: {}]   ;;  %s920_s1 = inlined_call_operand.vmem [shape: s32[16,1], index: 1, kind: input, shape index: {}]   ;;  %s921_s2 = inlined_call_operand.vmem [shape: f32[100,32], index: 2, kind: input, shape index: {}]   ;;  %s922_s3 = inlined_call_operand.vmem [shape: f32[8,32], index: 3, kind: input, shape index: {}]   ;;  %s923_s4 = inlined_call_operand.vmem [shape: f32[2,32], index: 4, kind: input, shape index: {}]   ;;  %s924_s5 = inlined_call_operand.vmem [shape: f32[1,32], index: 5, kind: input, shape index: {}]   ;;  %s925_s6 = inlined_call_operand.vmem [shape: f32[1,32], index: 6, kind: input, shape index: {}]   ;;  %s926_s7 = inlined_call_operand.hbm [shape: f32[16,32], index: 7, kind: output, shape index: {}]  }
   0x1   :  { %s12_s26 = sshll.u32 %s919_s0, 4  ;;  %s13_s26 = int_to_ptr.vmem [resolvable:$true] %s12_s26 }
   0x2   :  { %s618_s27 = scalar_lea.vmem %s13_s26, 16  ;;  %p623_p1 = scmp.lt.s32.totalorder %s13_s26, %s13_s26 }
   0x3   :  { %p619_p0 = scmp.ne.s32.totalorder %s13_s26, %s618_s27  ;;  %p624_p2 = scmp.lt.s32.totalorder %s618_s27, %s618_s27 }
   0x5   :  { %p625_p3 = por %p624_p2, %p623_p1 }
   0x7   :  { %p626_p4 = pnand %p625_p3, %p619_p0 }
   0x9   :  { %629 = shalt.err (!%p626_p4)  }
   0xa   :  { %s730_s28 = smov [#allocation5]  }
   0xb   :  { %15 = dma.vmem_to_smem %s13_s26, 16, %s730_s28, [#allocation4] }
   0xc   :  { %690 = dma.done.wait [#allocation4], 16 }
   0xd   :  { %691 = vsyncadd [#allocation4], 4294967280 }
   0xe   :  { %17 = sfence }
   0xf   :  { %18 = vsyncpa [#allocation7], 0 }
  0x10   :  { %20 = vsyncpa [#allocation7 + $0x1], 0  ;;  %s777_s29 = smov 0   ;;  %s779_s30 = smov 0  }
  0x11   :  { %s781_s0 = smov 0   ;;  %s783_s8 = smov 0  }
  0x12   :  { %s785_s9 = smov 0   ;;  %s787_s10 = smov 0  }
  0x13 LB: > { %s523_s11 = sadd.s32 4294967295, %s720_s10   ;;  %s524_s12 = sadd.s32 4294967294, %s720_s10   ;;  %s720_s10 = sphi %s787_s10, %s26_s10   ;;  %s716_s9 = sphi %s785_s9, %s938_s9   ;;  %s712_s8 = sphi %s783_s8, %s937_s8   ;;  %s708_s0 = sphi %s781_s0, %s936_s0   ;;  %s704_s30 = sphi %s779_s30, %s935_s30   ;;  %s700_s29 = sphi %s777_s29, %s934_s29  }
  0x14   : > { %s38_s13 = sadd.s32 1, %s716_s9  ;;  %s164_s14 = sadd.s32 1, %s708_s0 }
  0x15   : > { %p40_p5 = scmp.ge.s32.totalorder %s38_s13, 2  ;;  %p174_p6 = scmp.ne.s32.totalorder %s708_s0, %s704_s30 }
  0x16   : > { %p175_p7 = scmp.eq.s32.totalorder %s523_s11, 1  ;;  %p180_p8 = scmp.ne.s32.totalorder %s704_s30, %s700_s29 }
  0x17   : > { %s940_s13 = smov (%p40_p5, %s38_s13), 0  ;;  %p181_p10 = scmp.eq.s32.totalorder %s524_s12, 1 }
  0x18   : > { %929 = sst [smem:[#allocation12_spill]] %s940_s13  ;;  %p817_p9 = por %p175_p7, %p174_p6 }
  0x19   : > { %s161_s16 = ssub.s32 %s716_s9, %s940_s13  ;;  %p528_p11 = scmp.ge.s32.totalorder %s720_s10, 1 }
  0x1a   : > { %p162_p12 = scmp.eq.s32.totalorder %s161_s16, 0  ;;  %p824_p13 = por %p181_p10, %p180_p8 }
  0x1b   : > { %p224_p0 = scmp.lt.s32.totalorder %s720_s10, 3 }
  0x1c   : > { %s830_s18 = scalar_select %p162_p12, %s708_s0, %s164_s14  }
  0x1d   : > { %p225_p1 = pnand %p528_p11, %p224_p0 }
  0x1e   : > { %s927_s19 = sand.u32 (!%p225_p1), 1, %s704_s30   ;;  %p257_p2 = scmp.lt.s32.totalorder (!%p225_p1), %s712_s8, 1 }
  0x1f   : > { %228 = sbr.rel (%p225_p1) target bundleno = 525 (0x20d), region = 40  ;;  %s836_s20 = sshll.u32 (!%p225_p1), %s927_s19, 3 }
  0x20   : > { %s531_s21 = sshll.u32 (!%p225_p1), %s712_s8, 3  ;;  %s255_s27 = scalar_lea.vmem (!%p225_p1), [#allocation6], %s836_s20 }
  0x21   : > { %s722_s28 = smov (!%p225_p1), 0  }
  0x26   : > { %s258_s22 = scalar_select %p257_p2, %s712_s8, 1 }
  0x28   : > { %s530_s23 = sshll.u32 %s258_s22, 3 }
  0x29   : > { %s260_s26 = scalar_lea.vmem %s920_s1, %s530_s23 }
  0x2a LB: >> { %s275_s11 = sadd.s32 %s724_s28, %s531_s21  ;;  %s278_s13 = scalar_lea.vmem [#allocation2], %s724_s28  ;;  %s724_s28 = sphi %s722_s28, %s274_s28  }
  0x2b   : >> { %s276_s12 = sld [smem:[#allocation5 + %s275_s11]] }
  0x31   : >> { %s277_s19 = scalar_lea.vmem %s921_s2, %s276_s12 }
  0x32   : >> { %v296_v0 = vld [vmem:[%s277_s19] sm:$0x1] }
  0x33   : >> { %297 = vst [vmem:[%s278_s13] sm:$0x1] %v296_v0 }
  0x34   : >> { %322 = vsyncadd [#allocation3], 16  ;;  %s274_s28 = sadd.s32 1, %s724_s28  }
  0x35   : >> { %p271_p3 = scmp.ge.s32.totalorder %s274_s28, 8  }
  0x36   : > { %v324_v1 = vld [vmem:[%s260_s26] sm:$0xff] (%p271_p3)  ;;  %v731_v2 = vmov (%p271_p3), 0   ;;  %v732_v3 = vmov (%p271_p3), 0.0   ;;  %v334_v6 = vlaneseq (%p271_p3)  ;;  %s726_s23 = smov (%p271_p3), 0  }
  0x37   : > { %273 = sbr.rel (!%p271_p3) target bundleno = 42 (0x2a), region = 134  ;;  %615 = vset.pattern.permute.xlu0 (%p271_p3), %v731_v2  ;;  %vm326_vm0 = vcmp.eq.s32.totalorder (%p271_p3), %v324_v1, 0  ;;  %vm340_vm1 = vcmp.eq.s32.totalorder (%p271_p3), %v324_v1, 1  ;;  %v325_v9 = vld [vmem:[%s923_s4] sm:$0x3] (%p271_p3) }
  0x38   : > { %v532_v4 = vsel (%p271_p3), %vm326_vm0, 1.0, %v732_v3  ;;  %v533_v5 = vsel (%p271_p3), %vm340_vm1, 1.0, %v732_v3  ;;  %v335_v7 = vshrl.u32 (%p271_p3), %v334_v6, 7  ;;  %v323_v15 = vld [vmem:[%s922_s3] sm:$0xff] (%p271_p3) }
  0x39   : > { %331 = vperm.xlu0 (%p271_p3), %615, %v532_v4  }
  0x3a   : > { %v336_v8 = vsub.s32 (%p271_p3), 0, %v335_v7  ;;  %v350_v11 = vsub.s32 (%p271_p3), 1, %v335_v7 }
  0x3c   : > { %v337_v10 = vrot.slane (%p271_p3), %v325_v9, %v336_v8  ;;  %v351_v14 = vrot.slane (%p271_p3), %v325_v9, %v350_v11 }
  0x3d   : > { %345 = vperm.xlu0 (%p271_p3), %615, %v533_v5  }
  0xb8   : > { %v332_v12 = vpop.permute.xlu0 %331 }
  0xb9   : > { %v338_v13 = vmul.f32 %v337_v10, %v332_v12 }
  0xbb   : > { %v339_v17 = vadd.f32 %v338_v13, %v323_v15 }
  0xbc   : > { %v346_v16 = vpop.permute.xlu0 %345 }
  0xbd   : > { %v352_v18 = vmul.f32 %v351_v14, %v346_v16 }
  0xbf   : > { %v353_v19 = vadd.f32 %v352_v18, %v339_v17 }
  0xc0 LB: >> { %692 = dma.done.wait [#allocation3], 16  ;;  %s728_s23 = sphi %s726_s23, %s359_s23  }
  0xc1   : >> { %693 = vsyncadd [#allocation3], 4294967280  ;;  %s359_s23 = sadd.s32 1, %s728_s23  }
  0xc2   : >> { %p356_p4 = scmp.ge.s32.totalorder %s359_s23, 8  }
  0xc3   : > { %v363_v20 = vld [vmem:[#allocation2] sm:$0xff] (%p356_p4)  ;;  %vm365_vm2 = vcmask (%p356_p4), 261120   ;;  %s537_s11 = sshll.u32 (%p356_p4), %s712_s8, 7  ;;  %s412_s12 = sshll.u32 (%p356_p4), %s255_s27, 4  ;;  %s869_s12 = int_to_ptr.vmem [resolvable:$true] %s412_s12 }
  0xc4   : > { %358 = sbr.rel (!%p356_p4) target bundleno = 192 (0xc0), region = 145  ;;  %v364_v21 = vadd.f32 (%p356_p4), %v363_v20, %v353_v19  ;;  %v534_v32 = vld [vmem:[%s924_s5] ss:$0 sm:$0xff] (%p356_p4)  ;;  %s867_s19 = scalar_lea.hbm (%p356_p4), %s926_s7, %s537_s11 }
  0xc5   : > { %v535_v34 = vld [vmem:[%s925_s6] ss:$0 sm:$0xff] (%p356_p4)  ;;  %s932_s13 = sand.u32 (%p356_p4), 1, %s704_s30   ;;  %s630_s8 = scalar_lea.vmem (%p356_p4), %s869_s12, 128 }
  0xc6   : > { %v366_v22 = vsel (%p356_p4), %vm365_vm2, %v364_v21, 0.0  ;;  %s398_s21 = scalar_lea.sflag (%p356_p4), [#allocation7], %s932_s13  ;;  %p631_p5 = scmp.ne.s32.totalorder (%p356_p4), %s869_s12, %s630_s8 }
  0xc7   : > { %367 = vadd.xlane.f32.xlu0 (%p356_p4), %v366_v22  ;;  %s733_s22 = smov (%p356_p4), [#allocation6]  }
  0xc8   : > { %p632_p6 = pnand (%p356_p4), %p631_p5, %p817_p9  ;;  %s634_s23 = sshll.u32 (%p356_p4), %s733_s22, 4  ;;  %s635_s23 = int_to_ptr.vmem [resolvable:$false] %s634_s23 }
  0xc9   : > { %s636_s24 = scalar_lea.vmem (%p356_p4), %s635_s23, 256  ;;  %p637_p8 = scmp.lt.s32.totalorder (%p356_p4), %s869_s12, %s635_s23 }
  0xca   : > { %p633_p7 = pneg (%p356_p4), %p632_p6  ;;  %p638_p10 = scmp.lt.s32.totalorder (%p356_p4), %s636_s24, %s630_s8 }
  0xcc   : > { %p639_p11 = por %p638_p10, %p637_p8 }
  0xce   : > { %p640_p12 = pnand %p639_p11, %p633_p7 }
 0x154   : > { %v368_v23 = vpop.xlane.xlu0 %367 }
 0x155   : > { %v370_v24 = vmul.f32 0.03125, %v368_v23 }
 0x157   : > { %v371_v25 = vsub.f32 %v364_v21, %v370_v24 }
 0x159   : > { %v372_v26 = vmul.f32 %v371_v25, %v371_v25 }
 0x15b   : > { %v373_v27 = vsel %vm365_vm2, %v372_v26, 0.0 }
 0x15c   : > { %374 = vadd.xlane.f32.xlu0 %v373_v27 }
 0x1e9   : > { %v375_v28 = vpop.xlane.xlu0 %374 }
 0x1ea   : > { %v376_v29 = vmul.f32 0.03125, %v375_v28 }
 0x1ec   : > { %v377_v30 = vadd.f32 1e-12, %v376_v29 }
 0x1ee   : > { %616 = vrsqrt.f32 %v377_v30 }
 0x1f8   : > { %v617_v31 = vpop.eup %616 }
 0x1f9   : > { %v379_v33 = vmul.f32 %v617_v31, %v371_v25 }
 0x1fb   : > { %v387_v35 = vmul.f32 %v534_v32, %v379_v33 }
 0x1fd   : > { %v395_v36 = vadd.f32 %v535_v34, %v387_v35 }
 0x1ff   : > { %396 = vst.msk [vmem:[%s255_s27] sm:$0xff] %vm365_vm2, %v395_v36 }
 0x200   : > { %643 = shalt.err (!%p640_p12)
}
 0x201   : > { %s644_s20 = scalar_lea.hbm %s867_s19, 128  ;;  %s648_s26 = scalar_lea.hbm %s926_s7, 256 }
 0x202   : > { %p645_p0 = scmp.ne.s32.totalorder %s867_s19, %s644_s20  ;;  %p649_p3 = scmp.lt.u32.totalorder %s867_s19, %s926_s7 }
 0x203   : > { %p650_p4 = scmp.lt.u32.totalorder %s648_s26, %s644_s20  ;;  %p652_p6 = scmp.lt.u32.totalorder %s644_s20, %s867_s19 }
 0x204   : > { %p646_p1 = pnand %p645_p0, %p817_p9 }
 0x205   : > { %p651_p5 = por %p650_p4, %p649_p3 }
 0x206   : > { %p647_p2 = pneg %p646_p1 }
 0x207   : > { %p653_p7 = por %p652_p6, %p651_p5 }
 0x209   : > { %p654_p8 = pnand %p653_p7, %p647_p2 }
 0x20b   : > { %657 = shalt.err (!%p654_p8)
}
 0x20c   : > { %541 = dma.vmem_to_hbm [thread:$0]  (%p817_p9), %s869_s12, 128, %s867_s19, %s398_s21  }
 0x20d PF: > { %p547_p10 = scmp.ge.s32.totalorder %s720_s10, 2  ;;  %s424_s14 = sand.u32 1, %s700_s29  }
 0x20e   : > { %s425_s16 = scalar_lea.sflag [#allocation7], %s424_s14 }
 0x20f   : > { %p544_p11 = pnand %p547_p10, %p824_p13 }
 0x211   : > { %695 = dma.done.wait (!%p544_p11), %s425_s16, 128  }
 0x212   : > { %697 = vsyncadd (!%p544_p11), %s425_s16, 4294967168  ;;  %s26_s10 = sadd.s32 1, %s720_s10   ;;  %s933_s15 = sld [smem:[#allocation12_spill]] }
 0x213   : > { %p23_p12 = scmp.ge.s32.totalorder %s26_s10, 4   ;;  %s934_s29 = smov %s704_s30 }
 0x214   : > { %s935_s30 = smov %s708_s0  ;;  %s936_s0 = smov %s830_s18 }
 0x215   : > { %s937_s8 = smov %s716_s9  ;;  %25 = sbr.rel (!%p23_p12) target bundleno = 19 (0x13), region = 156 }
 0x218   : > { %s938_s9 = smov %s933_s15 }
 0x21c   :  { %430 = vsyncpa [#allocation7], 1 }
 0x21d   :  { %432 = vsyncpa [#allocation7 + $0x1], 1 }
 0x21e   :  { %433 = vsyncmov [#allocation3] }
 0x221   :  { %s434_s17 = vpop.sfrf %433 }
 0x222   :  { %p540_p9 = scmp.ne.s32.totalorder %s434_s17, 0 }
 0x224   :  { %438 = shalt.err (%p540_p9)  }

</bundles_post_ra>
